<compile_context>
chip_gen: v6e
topology: v6e:2x2x1
jax: 0.10.0
libtpu: 0.0.40
codegen_flags: <defaults>
</compile_context>

<pallas_src>
import jax
import jax.numpy as jnp
from jax.experimental import pallas as pl
from jax.experimental.pallas import tpu as pltpu


# ----------------------------------------------------------------------------
# Single-step cell kernel (matches the PyTorch module's forward signature)
# ----------------------------------------------------------------------------
def _agru_cell_kernel(fact_ref, c_ref, g_ref,
                      wf_ref, wc_ref, bf_ref, bc_ref,
                      out_ref):
    H = out_ref.shape[1]
    fact = fact_ref[...]
    C = c_ref[...]
    g = g_ref[...]                                   # (B, 1)

    # Two fused matmuls (were four):   zf = [Wr(fact)+br | W(fact)+bw]
    #                                  zc = [Ur(C)+bur   | U(C)+bu  ]
    zf = jnp.dot(fact, wf_ref[...], preferred_element_type=jnp.float32) + bf_ref[...]
    zc = jnp.dot(C, wc_ref[...], preferred_element_type=jnp.float32) + bc_ref[...]

    r = jax.nn.sigmoid(zf[:, :H] + zc[:, :H])
    h_tilda = jnp.tanh(zf[:, H:] + r * zc[:, H:])

    # h = g*h_tilda + (1-g)*C  ==  C + g*(h_tilda - C)
    out_ref[...] = (C + g * (h_tilda - C)).astype(out_ref.dtype)


def _cell_call(fact, C, g2, Wf, Wc, bf, bc):
    B, input_size = fact.shape
    H = C.shape[1]
    full = lambda shape: pl.BlockSpec(shape, lambda: (0,) * len(shape))
    return pl.pallas_call(
        _agru_cell_kernel,
        out_shape=jax.ShapeDtypeStruct((B, H), jnp.float32),
        grid=(),
        in_specs=[
            full((B, input_size)),        # fact
            full((B, H)),                 # C
            full((B, 1)),                 # g
            full((input_size, 2 * H)),    # Wf = [Wr^T | W^T]
            full((H, 2 * H)),             # Wc = [Ur^T | U^T]
            full((1, 2 * H)),             # bf = [br | bw]
            full((1, 2 * H)),             # bc = [bur | bu]
        ],
        out_specs=full((B, H)),
    )(fact, C, g2, Wf, Wc, bf, bc)


@jax.jit
def attention_gru_cell(fact, C, g, fused):
    """Pallas forward of AttentionGRUCell (one step).

    fact : (B, input_size) f32
    C    : (B, hidden_size) f32
    g    : (B,) f32
    fused: dict from fuse_params() — pre-transposed / pre-concatenated weights.
    """
    B = fact.shape[0]
    g2 = g.reshape(B, 1).astype(jnp.float32)
    return _cell_call(fact, C, g2,
                      fused["Wf"], fused["Wc"], fused["bf"], fused["bc"])


# ----------------------------------------------------------------------------
# Sequence kernel: whole DMN timestep loop in ONE pallas_call (grid=(T,))
# Weights stay VMEM-resident (constant index_map); C carried in VMEM scratch.
# ----------------------------------------------------------------------------
def _agru_seq_kernel(facts_ref, g_ref, c0_ref,
                     wf_ref, wc_ref, bf_ref, bc_ref,
                     out_ref, c_scratch):
    t = pl.program_id(0)
    H = c_scratch.shape[1]

    @pl.when(t == 0)
    def _():
        c_scratch[...] = c0_ref[...]

    fact = facts_ref[0]                              # (B, input)
    g = g_ref[0]                                     # (B, 1)
    C = c_scratch[...]                               # (B, H)

    zf = jnp.dot(fact, wf_ref[...], preferred_element_type=jnp.float32) + bf_ref[...]
    zc = jnp.dot(C, wc_ref[...], preferred_element_type=jnp.float32) + bc_ref[...]

    r = jax.nn.sigmoid(zf[:, :H] + zc[:, :H])
    h_tilda = jnp.tanh(zf[:, H:] + r * zc[:, H:])
    h = C + g * (h_tilda - C)

    c_scratch[...] = h                               # carry to next timestep
    out_ref[0] = h.astype(out_ref.dtype)


def _seq_call(facts, g3, C0, Wf, Wc, bf, bc):
    T, B, input_size = facts.shape
    H = C0.shape[1]
    return pl.pallas_call(
        _agru_seq_kernel,
        out_shape=jax.ShapeDtypeStruct((T, B, H), jnp.float32),
        grid_spec=pltpu.PrefetchScalarGridSpec(
            num_scalar_prefetch=0,
            grid=(T,),
            in_specs=[
                pl.BlockSpec((1, B, input_size), lambda t: (t, 0, 0)),  # fact[t]
                pl.BlockSpec((1, B, 1), lambda t: (t, 0, 0)),           # g[t]
                pl.BlockSpec((B, H), lambda t: (0, 0)),                 # C0
                pl.BlockSpec((input_size, 2 * H), lambda t: (0, 0)),    # Wf (resident)
                pl.BlockSpec((H, 2 * H), lambda t: (0, 0)),             # Wc (resident)
                pl.BlockSpec((1, 2 * H), lambda t: (0, 0)),             # bf (resident)
                pl.BlockSpec((1, 2 * H), lambda t: (0, 0)),             # bc (resident)
            ],
            out_specs=pl.BlockSpec((1, B, H), lambda t: (t, 0, 0)),
            scratch_shapes=[pltpu.VMEM((B, H), jnp.float32)],           # carried C
        ),
        compiler_params=pltpu.CompilerParams(
            dimension_semantics=("arbitrary",)),      # sequential recurrence
    )(facts, g3, C0, Wf, Wc, bf, bc)


@jax.jit
def attention_gru_sequence(facts, g_seq, C0, fused):
    """Run T timesteps of the attention-GRU cell in a single kernel launch.

    facts: (T, B, input_size) f32   g_seq: (T, B) f32   C0: (B, hidden) f32
    Returns all per-step hidden states (T, B, hidden); h[-1] is the final C.
    """
    T, B, _ = facts.shape
    g3 = g_seq.reshape(T, B, 1).astype(jnp.float32)
    return _seq_call(facts, g3, C0,
                     fused["Wf"], fused["Wc"], fused["bf"], fused["bc"])


# ----------------------------------------------------------------------------
# Parameter setup
# ----------------------------------------------------------------------------
def init_params(key, input_size, hidden_size):
    """xavier_normal weights (PyTorch-style (out, in)), uniform Linear biases."""
    ks = jax.random.split(key, 8)

    def xavier_normal(k, out_f, in_f):
        std = (2.0 / (in_f + out_f)) ** 0.5
        return std * jax.random.normal(k, (out_f, in_f), dtype=jnp.float32)

    def bias(k, out_f, in_f):
        bound = 1.0 / (in_f ** 0.5)
        return jax.random.uniform(k, (out_f,), minval=-bound, maxval=bound,
                                  dtype=jnp.float32)

    return {
        "Wr": xavier_normal(ks[0], hidden_size, input_size),
        "br": bias(ks[1], hidden_size, input_size),
        "Ur": xavier_normal(ks[2], hidden_size, hidden_size),
        "bur": bias(ks[3], hidden_size, hidden_size),
        "W": xavier_normal(ks[4], hidden_size, input_size),
        "bw": bias(ks[5], hidden_size, input_size),
        "U": xavier_normal(ks[6], hidden_size, hidden_size),
        "bu": bias(ks[7], hidden_size, hidden_size),
    }


def fuse_params(params):
    """One-time weight transpose + fusion (do NOT call per forward step)."""
    H = params["Wr"].shape[0]
    Wf = jnp.concatenate([params["Wr"].T, params["W"].T], axis=1)   # (in, 2H)
    Wc = jnp.concatenate([params["Ur"].T, params["U"].T], axis=1)   # (H, 2H)
    bf = jnp.concatenate([params["br"], params["bw"]]).reshape(1, 2 * H)
    bc = jnp.concatenate([params["bur"], params["bu"]]).reshape(1, 2 * H)
    return {"Wf": Wf, "Wc": Wc, "bf": bf, "bc": bc}


# ----------------------------------------------------------------------------
# Pure-JAX references
# ----------------------------------------------------------------------------
def reference_forward(fact, C, g, params):
    r = jax.nn.sigmoid(fact @ params["Wr"].T + params["br"]
                       + C @ params["Ur"].T + params["bur"])
    h_tilda = jnp.tanh(fact @ params["W"].T + params["bw"]
                       + r * (C @ params["U"].T + params["bu"]))
    g2 = g[:, None]
    return g2 * h_tilda + (1.0 - g2) * C


def reference_sequence(facts, g_seq, C0, params):
    C = C0
    outs = []
    for t in range(facts.shape[0]):
        C = reference_forward(facts[t], C, g_seq[t], params)
        outs.append(C)
    return jnp.stack(outs, axis=0)


if __name__ == "__main__":
    key = jax.random.PRNGKey(0)
    k_p, k_f, k_c, k_g, k_fs, k_gs = jax.random.split(key, 6)

    batch = 8
    input_size = 32      # input_size == hidden_size ("#hidden = #embedding")
    hidden_size = 32
    seq_len = 6

    params = init_params(k_p, input_size, hidden_size)
    fused = fuse_params(params)          # one-time fusion, not per call

    # --- single-step cell (module forward) ---
    fact = jax.random.normal(k_f, (batch, input_size), dtype=jnp.float32)
    C = jax.random.normal(k_c, (batch, hidden_size), dtype=jnp.float32)
    g = jax.random.uniform(k_g, (batch,), dtype=jnp.float32)

    h = attention_gru_cell(fact, C, g, fused)
    h = jax.block_until_ready(h)
    h_ref = reference_forward(fact, C, g, params)
    assert h.shape == (batch, hidden_size)
    assert jnp.allclose(h, h_ref, atol=1e-5, rtol=1e-5), "cell mismatch vs reference"

    # --- full timestep loop in one kernel launch (weights VMEM-resident) ---
    facts = jax.random.normal(k_fs, (seq_len, batch, input_size), dtype=jnp.float32)
    g_seq = jax.random.uniform(k_gs, (seq_len, batch), dtype=jnp.float32)

    h_seq = attention_gru_sequence(facts, g_seq, C, fused)
    h_seq = jax.block_until_ready(h_seq)
    h_seq_ref = reference_sequence(facts, g_seq, C, params)
    assert h_seq.shape == (seq_len, batch, hidden_size)
    assert jnp.allclose(h_seq, h_seq_ref, atol=1e-4, rtol=1e-4), \
        "sequence mismatch vs reference"

    print("KERNEL_OK")
</pallas_src>

<mosaic_0001>
module attributes {stable_mosaic.version = 11 : i64} {
  func.func @_agru_cell_kernel(%arg0: memref<8x32xf32, #tpu.memory_space<vmem>>, %arg1: memref<8x32xf32, #tpu.memory_space<vmem>>, %arg2: memref<8x1xf32, #tpu.memory_space<vmem>>, %arg3: memref<32x64xf32, #tpu.memory_space<vmem>>, %arg4: memref<32x64xf32, #tpu.memory_space<vmem>>, %arg5: memref<1x64xf32, #tpu.memory_space<vmem>>, %arg6: memref<1x64xf32, #tpu.memory_space<vmem>>, %arg7: memref<8x32xf32, #tpu.memory_space<vmem>>) attributes {dimension_semantics = [], scalar_prefetch = 0 : i64, scratch_operands = 0 : i64, tpu.core_type = #tpu.core_type<tc>} {
    %c0 = arith.constant 0 : index
    %c0_0 = arith.constant 0 : index
    %0 = vector.load %arg0[%c0, %c0_0] : memref<8x32xf32, #tpu.memory_space<vmem>>, vector<8x32xf32>
    %c0_1 = arith.constant 0 : index
    %c0_2 = arith.constant 0 : index
    %1 = vector.load %arg1[%c0_1, %c0_2] : memref<8x32xf32, #tpu.memory_space<vmem>>, vector<8x32xf32>
    %c0_3 = arith.constant 0 : index
    %c0_4 = arith.constant 0 : index
    %2 = vector.load %arg2[%c0_3, %c0_4] : memref<8x1xf32, #tpu.memory_space<vmem>>, vector<8x1xf32>
    %c0_5 = arith.constant 0 : index
    %c0_6 = arith.constant 0 : index
    %3 = vector.load %arg3[%c0_5, %c0_6] : memref<32x64xf32, #tpu.memory_space<vmem>>, vector<32x64xf32>
    %cst = arith.constant dense<0.000000e+00> : vector<8x64xf32>
    %4 = tpu.matmul %0, %3, %cst {dimension_numbers = #tpu.dot_dimension_numbers<[1], [0], [0], [1], [0, 0, 1, 1], [], []>} : vector<8x32xf32>, vector<32x64xf32>, vector<8x64xf32> -> vector<8x64xf32>
    %c0_7 = arith.constant 0 : index
    %c0_8 = arith.constant 0 : index
    %5 = vector.load %arg5[%c0_7, %c0_8] : memref<1x64xf32, #tpu.memory_space<vmem>>, vector<1x64xf32>
    %6 = vector.broadcast %5 : vector<1x64xf32> to vector<8x64xf32>
    %7 = arith.addf %4, %6 : vector<8x64xf32>
    %c0_9 = arith.constant 0 : index
    %c0_10 = arith.constant 0 : index
    %8 = vector.load %arg4[%c0_9, %c0_10] : memref<32x64xf32, #tpu.memory_space<vmem>>, vector<32x64xf32>
    %cst_11 = arith.constant dense<0.000000e+00> : vector<8x64xf32>
    %9 = tpu.matmul %1, %8, %cst_11 {dimension_numbers = #tpu.dot_dimension_numbers<[1], [0], [0], [1], [0, 0, 1, 1], [], []>} : vector<8x32xf32>, vector<32x64xf32>, vector<8x64xf32> -> vector<8x64xf32>
    %c0_12 = arith.constant 0 : index
    %c0_13 = arith.constant 0 : index
    %10 = vector.load %arg6[%c0_12, %c0_13] : memref<1x64xf32, #tpu.memory_space<vmem>>, vector<1x64xf32>
    %11 = vector.broadcast %10 : vector<1x64xf32> to vector<8x64xf32>
    %12 = arith.addf %9, %11 : vector<8x64xf32>
    %13 = vector.extract_strided_slice %7 {offsets = [0, 0], sizes = [8, 32], strides = [1, 1]} : vector<8x64xf32> to vector<8x32xf32>
    %14 = vector.extract_strided_slice %12 {offsets = [0, 0], sizes = [8, 32], strides = [1, 1]} : vector<8x64xf32> to vector<8x32xf32>
    %15 = arith.addf %13, %14 : vector<8x32xf32>
    %16 = arith.negf %15 : vector<8x32xf32>
    %17 = math.exp %16 : vector<8x32xf32>
    %cst_14 = arith.constant 1.000000e+00 : f32
    %18 = vector.broadcast %cst_14 : f32 to vector<8x32xf32>
    %19 = arith.addf %18, %17 : vector<8x32xf32>
    %20 = arith.divf %18, %19 : vector<8x32xf32>
    %21 = vector.extract_strided_slice %7 {offsets = [0, 32], sizes = [8, 32], strides = [1, 1]} : vector<8x64xf32> to vector<8x32xf32>
    %22 = vector.extract_strided_slice %12 {offsets = [0, 32], sizes = [8, 32], strides = [1, 1]} : vector<8x64xf32> to vector<8x32xf32>
    %23 = arith.mulf %20, %22 : vector<8x32xf32>
    %24 = arith.addf %21, %23 : vector<8x32xf32>
    %25 = math.tanh %24 : vector<8x32xf32>
    %26 = arith.subf %25, %1 : vector<8x32xf32>
    %27 = vector.broadcast %2 : vector<8x1xf32> to vector<8x32xf32>
    %28 = arith.mulf %27, %26 : vector<8x32xf32>
    %29 = arith.addf %1, %28 : vector<8x32xf32>
    %c0_15 = arith.constant 0 : index
    %c0_16 = arith.constant 0 : index
    %30 = vector.load %arg7[%c0_15, %c0_16] : memref<8x32xf32, #tpu.memory_space<vmem>>, vector<8x32xf32>
    tpu.vector_store %arg7[%c0_15, %c0_16], %29 {strides = array<i32>} : memref<8x32xf32, #tpu.memory_space<vmem>>, vector<8x32xf32>,
    return
  }
}

</mosaic_0001>

<bundles_post_ra>
// kernel: attention_gru_cell.1
= control target key start
LH: loop header
LB: loop body
LE: loop exit
PB: predicated region body
PF: predicated region fallthrough
CT: control target
= control target key end

     0   :  { %12 = vsyncpa [#allocation3], 0  ;;  %s508_s0 = inlined_call_operand.vmem [shape: f32[8,32], index: 0, kind: input, shape index: {}]   ;;  %s509_s1 = inlined_call_operand.hbm [shape: f32[8,32], index: 1, kind: input, shape index: {}]   ;;  %s510_s2 = inlined_call_operand.vmem [shape: f32[8,1], index: 2, kind: input, shape index: {}]   ;;  %s511_s3 = inlined_call_operand.hbm [shape: f32[32,64], index: 3, kind: input, shape index: {}]   ;;  %s512_s4 = inlined_call_operand.hbm [shape: f32[32,64], index: 4, kind: input, shape index: {}]   ;;  %s513_s5 = inlined_call_operand.vmem [shape: f32[1,64], index: 5, kind: input, shape index: {}]   ;;  %s514_s6 = inlined_call_operand.vmem [shape: f32[1,64], index: 6, kind: input, shape index: {}]   ;;  %s515_s7 = inlined_call_operand.hbm [shape: f32[8,32], index: 7, kind: output, shape index: {}]  }
   0x1   :  { %13 = vsyncpa [#allocation6], 0 }
   0x2   :  { %14 = vsyncpa [#allocation4], 0  ;;  %s430_s24 = smov [#allocation5]  }
   0x3   :  { %s34_s25 = sshll.u32 %s430_s24, 4  ;;  %s35_s25 = int_to_ptr.vmem [resolvable:$true] %s34_s25 }
   0x4   :  { %s352_s26 = scalar_lea.vmem %s35_s25, 512  ;;  %p357_p1 = scmp.lt.s32.totalorder %s35_s25, %s35_s25 }
   0x5   :  { %p353_p0 = scmp.ne.s32.totalorder %s35_s25, %s352_s26  ;;  %p358_p2 = scmp.lt.s32.totalorder %s352_s26, %s352_s26 }
   0x7   :  { %p359_p3 = por %p358_p2, %p357_p1 }
   0x9   :  { %p360_p4 = pnand %p359_p3, %p353_p0 }
   0xb   :  { %363 = shalt.err (!%p360_p4)
}
   0xc   :  { %s431_s27 = smov 128   ;;  %s432_s28 = smov 8  }
   0xd   :  { %40 = dma.hbm_to_vmem [thread:$0]  %s511_s3, 512, %s35_s25, [#allocation6], %s431_s27, %s431_s27, %s432_s28  }
   0xe   :  { %s433_s8 = smov [#allocation2]   ;;  %s434_s10 = smov [#allocation7]  }
   0xf   :  { %s23_s9 = sshll.u32 %s433_s8, 4  ;;  %s46_s11 = sshll.u32 %s434_s10, 4  ;;  %s24_s9 = int_to_ptr.vmem [resolvable:$true] %s23_s9  ;;  %s47_s11 = int_to_ptr.vmem [resolvable:$true] %s46_s11 }
  0x10   :  { %s372_s12 = scalar_lea.vmem %s24_s9, 128  ;;  %p377_p6 = scmp.lt.s32.totalorder %s24_s9, %s24_s9 }
  0x11   :  { %p373_p5 = scmp.ne.s32.totalorder %s24_s9, %s372_s12  ;;  %p378_p7 = scmp.lt.s32.totalorder %s372_s12, %s372_s12 }
  0x13   :  { %p379_p8 = por %p378_p7, %p377_p6 }
  0x15   :  { %p380_p9 = pnand %p379_p8, %p373_p5 }
  0x17   :  { %383 = shalt.err (!%p380_p9)
}
  0x18   :  { %26 = dma.hbm_to_vmem [thread:$0]  %s509_s1, 128, %s24_s9, [#allocation3]  }
  0x19   :  { %s392_s15 = scalar_lea.vmem %s47_s11, 512  ;;  %p397_p11 = scmp.lt.s32.totalorder %s47_s11, %s47_s11 }
  0x1a   :  { %p393_p10 = scmp.ne.s32.totalorder %s47_s11, %s392_s15  ;;  %p398_p12 = scmp.lt.s32.totalorder %s392_s15, %s392_s15 }
  0x1c   :  { %p399_p13 = por %p398_p12, %p397_p11 }
  0x1e   :  { %p400_p0 = pnand %p399_p13, %p393_p10 }
  0x20   :  { %403 = shalt.err (!%p400_p0)
}
  0x21   :  { %52 = dma.hbm_to_vmem [thread:$0]  %s512_s4, 512, %s47_s11, [#allocation6], %s431_s27, %s431_s27, %s432_s28  }
  0x22   :  { %424 = dma.done.wait [#allocation3], 128  }
  0x23   :  { %425 = vsyncadd [#allocation3], 4294967168 }
  0x24   :  { %426 = dma.done.wait [#allocation6], 1024  }
  0x25   :  { %427 = vsyncadd [#allocation6], 4294966272  ;;  %v435_v0 = vmov 0.0   ;;  %vm436_vm0 = vmmov 0   ;;  %v72_v1 = vld [vmem:[#allocation5 + $0x18] sm:$0xff]  ;;  %v71_v3 = vld [vmem:[#allocation5 + $0x10] sm:$0xff] }
  0x26   :  { %303 = vmatprep.subr.mxu0 %v435_v0  ;;  %314 = vmatprep.subr.mxu1 %v435_v0  ;;  %v157_v2 = vld [vmem:[#allocation7 + $0x18] sm:$0xff]  ;;  %v156_v4 = vld [vmem:[#allocation7 + $0x10] sm:$0xff]  ;;  %v70_v5 = vld [vmem:[#allocation5 + $0x8] sm:$0xff]  ;;  %vm80_vm1 = vcmask 261120   ;;  %v437_v12 = vmov 0   ;;  %s438_s20 = smov 32  }
  0x27   :  { %311 = vmatprep.mubr.msk.f32.mxu0 %vm436_vm0, %v435_v0  ;;  %322 = vmatprep.mubr.msk.f32.mxu1 %vm436_vm0, %v435_v0  ;;  %v155_v6 = vld [vmem:[#allocation7 + $0x8] sm:$0xff]  ;;  %v69_v7 = vld [vmem:[#allocation5] sm:$0xff]  ;;  %v66_v9 = vld [vmem:[%s508_s0] sm:$0xff]  ;;  %s439_s21 = smov 96  }
  0x28   :  { %304 = vmatpush3.msra.mxu0 %v72_v1  ;;  %315 = vmatpush3.msra.mxu1 %v157_v2  ;;  %v154_v8 = vld [vmem:[#allocation7] sm:$0xff]  ;;  %v67_v10 = vld [vmem:[#allocation2] sm:$0xff] }
  0x29   :  { %305 = vmatprep.subr.mxu0 %v435_v0  ;;  %316 = vmatprep.subr.mxu1 %v435_v0  ;;  %v68_v11 = vld [vmem:[%s510_s2] sm:$0xff]  ;;  %s440_s2 = smov [#allocation8]  }
  0x2a   :  { %306 = vmatpush3.msra.mxu0 %v71_v3  ;;  %317 = vmatpush3.msra.mxu1 %v156_v4  ;;  %v290_v13 = vld [vmem:[%s514_s6] ss:$0 sm:$0xff] }
  0x2b   :  { %307 = vmatprep.subr.mxu0 %v435_v0  ;;  %318 = vmatprep.subr.mxu1 %v435_v0  ;;  %v288_v19 = vld [vmem:[%s513_s5] ss:$0 sm:$0xff]  ;;  %s278_s5 = sshll.u32 %s440_s2, 4  ;;  %s279_s5 = int_to_ptr.vmem [resolvable:$true] %s278_s5 }
  0x2c   :  { %308 = vmatpush3.msra.mxu0 %v70_v5  ;;  %319 = vmatpush3.msra.mxu1 %v155_v6  ;;  %s404_s6 = scalar_lea.vmem %s279_s5, 128  ;;  %p409_p2 = scmp.lt.s32.totalorder %s279_s5, %s279_s5 }
  0x2d   :  { %309 = vmatprep.subr.mxu0 %v435_v0  ;;  %320 = vmatprep.subr.mxu1 %v435_v0  ;;  %p405_p1 = scmp.ne.s32.totalorder %s279_s5, %s404_s6  ;;  %p410_p3 = scmp.lt.s32.totalorder %s404_s6, %s404_s6 }
  0x2e   :  { %310 = vmatpush3.msra.mxu0 %v69_v7  ;;  %321 = vmatpush3.msra.mxu1 %v154_v8 }
  0x2f   :  { %312 = vmatmul.mubr.msk.f32.vlgmr.msra.gmra.mxu0 %vm80_vm1, %v66_v9  ;;  %323 = vmatmul.mubr.msk.f32.vlgmr.msra.gmra.mxu1 %vm80_vm1, %v67_v10  ;;  %p411_p4 = por %p410_p3, %p409_p2 }
  0x30   :  { %336 = vset.pattern.permute.xlu1 %v437_v12  ;;  %337 = vset.pattern.permute.xlu0 %v437_v12 }
  0x31   :  { %262 = vperm.xlu1 %336, %v68_v11   ;;  %p412_p5 = pnand %p411_p4, %p405_p1 }
  0x35   :  { %256 = vrot.lane.b32.xlu1 %v67_v10, %s438_s20 }
  0xac   :  { %v263_v30 = vpop.permute.xlu1 %262 }
  0xb0   :  { %v257_v31 = vpop.permute.xlu1 %256 }
  0xef   :  { %v150_v14 = vpop.f32.mrf.mxu0  ;;  %v234_v15 = vpop.f32.mrf.mxu1 }
  0xf0   :  { %v235_v16 = vadd.f32 %v290_v13, %v234_v15  ;;  %v151_v20 = vadd.f32 %v288_v19, %v150_v14 }
  0xf1   :  { %v324_v17 = vpop.f32.mrf.mxu1  ;;  %v313_v18 = vpop.f32.mrf.mxu0 }
  0xf2   :  { %246 = vrot.lane.b32.xlu0 %v235_v16, %s439_s21  ;;  %v238_v21 = vadd.f32 %v235_v16, %v151_v20 }
  0xf4   :  { %v292_v22 = vmul.f32 -1.442695, %v238_v21 }
  0xf6   :  { %338 = vpow2.f32 %v292_v22 }
 0x103   :  { %v339_v23 = vpop.eup %338 }
 0x104   :  { %v242_v24 = vadd.f32 1.0, %v339_v23 }
 0x106   :  { %340 = vrcp.f32 %v242_v24 }
 0x113   :  { %v341_v25 = vpop.eup %340 }
 0x164   :  { %v247_v26 = vpop.permute.xlu0 %246 }
 0x165   :  { %v249_v27 = vmul.f32 %v341_v25, %v247_v26 }
 0x167   :  { %251 = vrot.lane.b32.xlu0 %v249_v27, %s438_s20 }
 0x1d9   :  { %v252_v28 = vpop.permute.xlu0 %251 }
 0x1da   :  { %v254_v29 = vadd.f32 %v252_v28, %v151_v20 }
 0x1dc   :  { %342 = vtanh.f32 %v254_v29 }
 0x1e9   :  { %v343_v32 = vpop.eup %342 }
 0x1ea   :  { %v259_v33 = vsub.f32 %v343_v32, %v257_v31 }
 0x1ec   :  { %v265_v34 = vmul.f32 %v263_v30, %v259_v33 }
 0x1ee   :  { %267 = vrot.lane.b32.xlu0 %v265_v34, %s439_s21 }
 0x260   :  { %v268_v35 = vpop.permute.xlu0 %267 }
 0x261   :  { %v270_v36 = vadd.f32 %v268_v35, %v67_v10 }
 0x263   :  { %271 = vst.msk [vmem:[#allocation8] sm:$0xff] %vm80_vm1, %v270_v36 }
 0x264   :  { %415 = shalt.err (!%p412_p5)
}
 0x265   :  { %281 = dma.vmem_to_hbm [thread:$0]  %s279_s5, 128, %s515_s7, [#allocation4]  }
 0x266   :  { %428 = dma.done.wait [#allocation4], 128  }
 0x267   :  { %429 = vsyncadd [#allocation4], 4294967168 }
 0x268   :  { %285 = vsyncpa [#allocation3], 1 }
 0x269   :  { %286 = vsyncpa [#allocation6], 1 }
 0x26a   :  { %287 = vsyncpa [#allocation4], 1 }

</bundles_post_ra>
